<compile_context>
chip_gen: v6e
topology: v6e:2x2x1
jax: 0.10.0
libtpu: 0.0.40
codegen_flags: <defaults>
</compile_context>

<pallas_src>
import functools

import jax
import jax.numpy as jnp
from jax.experimental import pallas as pl
from jax.experimental.pallas import tpu as pltpu


# ---------------------------------------------------------------------------
# Kernel
# ---------------------------------------------------------------------------
def _residual_kernel(x_ref, w1_ref, b1_ref, w2_ref, b2_ref, o_ref, *,
                     L, d1, d2, neg_slope):
    """Fused LeakyReLU->Conv->LeakyReLU->Conv + skip add for a (bN, C, L) block."""
    bn, C, _ = x_ref.shape

    # Hoisted once per grid step: lane iota + the two boundary masks per conv
    # (JAX does not CSE broadcast_in_dim, so these must not live in the tap fn).
    lane = jax.lax.broadcasted_iota(jnp.int32, (C, L), 1)
    m1l, m1r = lane >= d1, lane < L - d1
    m2l, m2r = lane >= d2, lane < L - d2

    # Weights / biases loaded once and reused for every batch element in the block.
    w1 = w1_ref[...]      # (C, 3C) bf16, taps folded into the contraction axis
    w2 = w2_ref[...]      # (C, 3C) bf16
    b1 = b1_ref[...]      # (C, 1)  f32
    b2 = b2_ref[...]      # (C, 1)  f32

    def stacked_taps(h, d, m_left, m_right):
        # 'same' zero padding realized via XLU lane rotation + boundary masks.
        # Taps [x[l-d], x[l], x[l+d]] are stacked along channels so the whole
        # k=3 conv becomes ONE MXU matmul with contraction depth 3*C.
        t_lo = jnp.where(m_left, pltpu.roll(h, d % L, 1), 0.0)      # x[l - d]
        t_hi = jnp.where(m_right, pltpu.roll(h, (-d) % L, 1), 0.0)  # x[l + d]
        return jnp.concatenate([t_lo, h, t_hi], axis=0)             # (3C, L)

    # Static unroll over the (small) batch block; each conv is a single
    # (C, 3C) x (3C, L) bf16 matmul with an f32 accumulator.
    # NOTE: bias stays a (C, 1) VPU add; folding it into the matmul would make
    # the contraction 3C+1 = 49 rows and break 8-sublane alignment.
    for b in range(bn):
        x = x_ref[b].astype(jnp.float32)                         # (C, L)
        h = jnp.where(x > 0, x, neg_slope * x)                    # LeakyReLU(0.2)
        s = stacked_taps(h, d1, m1l, m1r).astype(jnp.bfloat16)    # (3C, L) bf16
        h = jnp.dot(w1, s, preferred_element_type=jnp.float32) + b1
        h = jnp.where(h > 0, h, neg_slope * h)                    # LeakyReLU(0.2)
        s = stacked_taps(h, d2, m2l, m2r).astype(jnp.bfloat16)
        h = jnp.dot(w2, s, preferred_element_type=jnp.float32) + b2
        o_ref[b] = (h + x).astype(o_ref.dtype)                    # residual add


# ---------------------------------------------------------------------------
# Wrapper
# ---------------------------------------------------------------------------
def _pick_batch_block(N, C, L, target_block_bytes=1 << 19, min_grid_steps=4):
    """Batch elements per grid step: amortize per-step overhead with big slabs
    but keep >= min_grid_steps steps so the pipeline / v7x's 2 TCs have work."""
    per = C * L * 4                                    # one batch element, f32
    bn = min(N, max(1, target_block_bytes // per))     # aim for ~target-size slabs
    bn = min(bn, max(1, N // min(N, min_grid_steps)))  # keep several grid steps
    while N % bn:                                      # divisor of N (no ragged tail)
        bn -= 1
    return bn


def residual_forward(x, w1_fold, b1_col, w2_fold, b2_col, *, d1, d2,
                     neg_slope=0.2, batch_block=None):
    """x: (N, C, L).  w*_fold: (C_out, K*C_in) bf16 (pre-folded).  b*_col: (C, 1)."""
    N, C, L = x.shape
    assert L % 128 == 0 and C % 8 == 0, "lane/sublane-dense blocks need L%128==0, C%8==0"
    assert w1_fold.shape == w2_fold.shape == (C, 3 * C)
    KC = w1_fold.shape[1]

    bn = batch_block if batch_block is not None else _pick_batch_block(N, C, L)
    assert N % bn == 0

    kernel = functools.partial(_residual_kernel, L=L, d1=d1, d2=d2,
                               neg_slope=neg_slope)

    # VMEM budget: double-buffered in/out activation blocks, resident weights,
    # per-element (3C, L) tap slabs + intermediates.  Cap below v7x's 64 MiB
    # physical VMEM; floor at 16 MiB (v5e's default scoped limit).
    blk = bn * C * L * 4
    vmem_limit = int(min(max(8 * blk + (2 << 20), 16 << 20), 48 << 20))

    return pl.pallas_call(
        kernel,
        out_shape=jax.ShapeDtypeStruct((N, C, L), x.dtype),
        grid=(N // bn,),
        in_specs=[
            pl.BlockSpec((bn, C, L), lambda i: (i, 0, 0)),   # activations (lane-dense L)
            pl.BlockSpec((C, KC), lambda i: (0, 0)),         # folded weights, VMEM-resident
            pl.BlockSpec((C, 1), lambda i: (0, 0)),
            pl.BlockSpec((C, KC), lambda i: (0, 0)),
            pl.BlockSpec((C, 1), lambda i: (0, 0)),
        ],
        out_specs=pl.BlockSpec((bn, C, L), lambda i: (i, 0, 0)),
        compiler_params=pltpu.CompilerParams(
            dimension_semantics=("parallel",),               # batch blocks across TCs
            vmem_limit_bytes=vmem_limit,
        ),
    )(x, w1_fold, b1_col, w2_fold, b2_col)


class ResidualPallas:
    """JAX/Pallas port of Residual.forward: wrapped-branch output + identity skip."""

    def __init__(self, key, channels=16, kernel_size=3, dilations=(1, 3),
                 cumulative_delay=0):
        assert kernel_size == 3 and len(dilations) == 2
        self.d1, self.d2 = dilations
        # Non-streaming convs => branch cumulative_delay == 0, AlignBranches no-op.
        # TODO(synk): streaming delay compensation (nonzero branch delay / cached
        # convs) is not modeled; forward == net(x) + x.
        self.cumulative_delay = 0 + cumulative_delay

        C, K = channels, kernel_size
        k1, k2, k3, k4 = jax.random.split(key, 4)
        dt = jnp.float32
        # Deterministic synthetic weights in PyTorch Conv1d layout (C_out, C_in, K).
        self.w1 = 0.3 * jax.random.normal(k1, (C, C, K), dt)
        self.b1 = 0.1 * jax.random.normal(k2, (C,), dt)
        self.w2 = 0.3 * jax.random.normal(k3, (C, C, K), dt)
        self.b2 = 0.1 * jax.random.normal(k4, (C,), dt)

        # One-time kernel-side prep (kept out of the forward path):
        #  * fold taps into the contraction axis: (C_out, C_in, K) -> (C_out, K*C_in),
        #    column k*C_in + ci == w[:, ci, k], matching the in-kernel
        #    [x[l-d]; x[l]; x[l+d]] tap stacking,
        #  * weights explicitly in bf16 (MXU-native operands; accumulation stays f32),
        #  * biases as (C, 1) columns.
        self.w1_fold = jnp.transpose(self.w1, (0, 2, 1)).reshape(C, K * C).astype(jnp.bfloat16)
        self.w2_fold = jnp.transpose(self.w2, (0, 2, 1)).reshape(C, K * C).astype(jnp.bfloat16)
        self.b1_col = self.b1.reshape(C, 1)
        self.b2_col = self.b2.reshape(C, 1)

    def __call__(self, x):
        return residual_forward(x, self.w1_fold, self.b1_col,
                                self.w2_fold, self.b2_col,
                                d1=self.d1, d2=self.d2, neg_slope=0.2)


# ---------------------------------------------------------------------------
# Plain-JAX reference for validation.
# ---------------------------------------------------------------------------
def _conv1d_ref(x, w, b, dilation):
    pad = dilation * (w.shape[-1] - 1) // 2
    return jax.lax.conv_general_dilated(
        x, w, window_strides=(1,), padding=[(pad, pad)],
        rhs_dilation=(dilation,),
        dimension_numbers=("NCH", "OIH", "NCH"),
    ) + b[None, :, None]


def _residual_ref(x, w1, b1, w2, b2, d1, d2, neg_slope=0.2):
    h = jnp.where(x > 0, x, neg_slope * x)
    h = _conv1d_ref(h, w1, b1, d1)
    h = jnp.where(h > 0, h, neg_slope * h)
    h = _conv1d_ref(h, w2, b2, d2)
    return h + x


if __name__ == "__main__":
    key = jax.random.PRNGKey(0)
    k_param, k_x = jax.random.split(key)

    batch, channels, seq = 8, 16, 256   # seq multiple of 128 -> lane-dense tiles
    block = ResidualPallas(k_param, channels=channels, kernel_size=3,
                           dilations=(1, 3))

    x = jax.random.normal(k_x, (batch, channels, seq), jnp.float32)

    y = jax.block_until_ready(block(x))
    assert y.shape == (batch, channels, seq), y.shape

    # The kernel deliberately uses bf16 weights/taps on the MXU (f32 accumulation),
    # so compare against a reference that uses the same bf16-quantized weights.
    w1_q = block.w1.astype(jnp.bfloat16).astype(jnp.float32)
    w2_q = block.w2.astype(jnp.bfloat16).astype(jnp.float32)
    y_ref = _residual_ref(x, w1_q, block.b1, w2_q, block.b2, block.d1, block.d2)

    err = float(jnp.max(jnp.abs(y - y_ref)))
    assert jnp.allclose(y, y_ref, atol=5e-2, rtol=5e-2), err

    print("KERNEL_OK")
</pallas_src>

<mosaic_0001>
module attributes {stable_mosaic.version = 11 : i64} {
  func.func @_residual_kernel(%arg0: i32, %arg1: memref<2x16x256xf32, #tpu.memory_space<vmem>>, %arg2: memref<16x48xbf16, #tpu.memory_space<vmem>>, %arg3: memref<16x1xf32, #tpu.memory_space<vmem>>, %arg4: memref<16x48xbf16, #tpu.memory_space<vmem>>, %arg5: memref<16x1xf32, #tpu.memory_space<vmem>>, %arg6: memref<2x16x256xf32, #tpu.memory_space<vmem>>) attributes {dimension_semantics = [#tpu.dimension_semantics<parallel>], iteration_bounds = array<i64: 4>, scalar_prefetch = 0 : i64, scratch_operands = 0 : i64, tpu.core_type = #tpu.core_type<tc>, window_params = [{transform_indices = @transform_0, window_bounds = array<i64: 2, 16, 256>}, {pipeline_mode = #tpu.pipeline_mode<synchronous>, transform_indices = @transform_1, window_bounds = array<i64: 16, 48>}, {pipeline_mode = #tpu.pipeline_mode<synchronous>, transform_indices = @transform_2, window_bounds = array<i64: 16, 1>}, {pipeline_mode = #tpu.pipeline_mode<synchronous>, transform_indices = @transform_3, window_bounds = array<i64: 16, 48>}, {pipeline_mode = #tpu.pipeline_mode<synchronous>, transform_indices = @transform_4, window_bounds = array<i64: 16, 1>}, {transform_indices = @transform_5, window_bounds = array<i64: 2, 16, 256>}]} {
    %0 = tpu.iota {dimensions = array<i32: 1>} : vector<16x256xi32>
    %c1_i32 = arith.constant 1 : i32
    %1 = vector.broadcast %c1_i32 : i32 to vector<16x256xi32>
    %2 = arith.cmpi sge, %0, %1 : vector<16x256xi32>
    %c255_i32 = arith.constant 255 : i32
    %3 = vector.broadcast %c255_i32 : i32 to vector<16x256xi32>
    %4 = arith.cmpi slt, %0, %3 : vector<16x256xi32>
    %c3_i32 = arith.constant 3 : i32
    %5 = vector.broadcast %c3_i32 : i32 to vector<16x256xi32>
    %6 = arith.cmpi sge, %0, %5 : vector<16x256xi32>
    %c253_i32 = arith.constant 253 : i32
    %7 = vector.broadcast %c253_i32 : i32 to vector<16x256xi32>
    %8 = arith.cmpi slt, %0, %7 : vector<16x256xi32>
    %c0 = arith.constant 0 : index
    %c0_0 = arith.constant 0 : index
    %9 = vector.load %arg2[%c0, %c0_0] : memref<16x48xbf16, #tpu.memory_space<vmem>>, vector<16x48xbf16>
    %c0_1 = arith.constant 0 : index
    %c0_2 = arith.constant 0 : index
    %10 = vector.load %arg4[%c0_1, %c0_2] : memref<16x48xbf16, #tpu.memory_space<vmem>>, vector<16x48xbf16>
    %c0_3 = arith.constant 0 : index
    %c0_4 = arith.constant 0 : index
    %11 = vector.load %arg3[%c0_3, %c0_4] : memref<16x1xf32, #tpu.memory_space<vmem>>, vector<16x1xf32>
    %c0_5 = arith.constant 0 : index
    %c0_6 = arith.constant 0 : index
    %12 = vector.load %arg5[%c0_5, %c0_6] : memref<16x1xf32, #tpu.memory_space<vmem>>, vector<16x1xf32>
    %c0_7 = arith.constant 0 : index
    %c0_8 = arith.constant 0 : index
    %c0_9 = arith.constant 0 : index
    %13 = vector.load %arg1[%c0_7, %c0_8, %c0_9] : memref<2x16x256xf32, #tpu.memory_space<vmem>>, vector<1x16x256xf32>
    %14 = vector.shape_cast %13 : vector<1x16x256xf32> to vector<16x256xf32>
    %cst = arith.constant 0.000000e+00 : f32
    %15 = vector.broadcast %cst : f32 to vector<16x256xf32>
    %16 = arith.cmpf ogt, %14, %15 : vector<16x256xf32>
    %cst_10 = arith.constant 2.000000e-01 : f32
    %17 = vector.broadcast %cst_10 : f32 to vector<16x256xf32>
    %18 = arith.mulf %17, %14 : vector<16x256xf32>
    %19 = arith.select %16, %14, %18 : vector<16x256xi1>, vector<16x256xf32>
    %c1_i32_11 = arith.constant 1 : i32
    %20 = tpu.dynamic_rotate %19 by %c1_i32_11 dim 1 : vector<16x256xf32>, i32 -> vector<16x256xf32>
    %cst_12 = arith.constant 0.000000e+00 : f32
    %21 = vector.broadcast %cst_12 : f32 to vector<16x256xf32>
    %22 = arith.select %2, %20, %21 : vector<16x256xi1>, vector<16x256xf32>
    %c255_i32_13 = arith.constant 255 : i32
    %23 = tpu.dynamic_rotate %19 by %c255_i32_13 dim 1 : vector<16x256xf32>, i32 -> vector<16x256xf32>
    %cst_14 = arith.constant 0.000000e+00 : f32
    %24 = vector.broadcast %cst_14 : f32 to vector<16x256xf32>
    %25 = arith.select %4, %23, %24 : vector<16x256xi1>, vector<16x256xf32>
    %26 = tpu.concatenate %22, %19, %25 in 0 : vector<16x256xf32>, vector<16x256xf32>, vector<16x256xf32> -> vector<48x256xf32>
    %27 = arith.truncf %26 : vector<48x256xf32> to vector<48x256xbf16>
    %cst_15 = arith.constant dense<0.000000e+00> : vector<16x256xf32>
    %28 = tpu.matmul %9, %27, %cst_15 {dimension_numbers = #tpu.dot_dimension_numbers<[1], [0], [0], [1], [0, 0, 1, 1], [], []>} : vector<16x48xbf16>, vector<48x256xbf16>, vector<16x256xf32> -> vector<16x256xf32>
    %29 = vector.broadcast %11 : vector<16x1xf32> to vector<16x256xf32>
    %30 = arith.addf %28, %29 : vector<16x256xf32>
    %cst_16 = arith.constant 0.000000e+00 : f32
    %31 = vector.broadcast %cst_16 : f32 to vector<16x256xf32>
    %32 = arith.cmpf ogt, %30, %31 : vector<16x256xf32>
    %cst_17 = arith.constant 2.000000e-01 : f32
    %33 = vector.broadcast %cst_17 : f32 to vector<16x256xf32>
    %34 = arith.mulf %33, %30 : vector<16x256xf32>
    %35 = arith.select %32, %30, %34 : vector<16x256xi1>, vector<16x256xf32>
    %c3_i32_18 = arith.constant 3 : i32
    %36 = tpu.dynamic_rotate %35 by %c3_i32_18 dim 1 : vector<16x256xf32>, i32 -> vector<16x256xf32>
    %cst_19 = arith.constant 0.000000e+00 : f32
    %37 = vector.broadcast %cst_19 : f32 to vector<16x256xf32>
    %38 = arith.select %6, %36, %37 : vector<16x256xi1>, vector<16x256xf32>
    %c253_i32_20 = arith.constant 253 : i32
    %39 = tpu.dynamic_rotate %35 by %c253_i32_20 dim 1 : vector<16x256xf32>, i32 -> vector<16x256xf32>
    %cst_21 = arith.constant 0.000000e+00 : f32
    %40 = vector.broadcast %cst_21 : f32 to vector<16x256xf32>
    %41 = arith.select %8, %39, %40 : vector<16x256xi1>, vector<16x256xf32>
    %42 = tpu.concatenate %38, %35, %41 in 0 : vector<16x256xf32>, vector<16x256xf32>, vector<16x256xf32> -> vector<48x256xf32>
    %43 = arith.truncf %42 : vector<48x256xf32> to vector<48x256xbf16>
    %cst_22 = arith.constant dense<0.000000e+00> : vector<16x256xf32>
    %44 = tpu.matmul %10, %43, %cst_22 {dimension_numbers = #tpu.dot_dimension_numbers<[1], [0], [0], [1], [0, 0, 1, 1], [], []>} : vector<16x48xbf16>, vector<48x256xbf16>, vector<16x256xf32> -> vector<16x256xf32>
    %45 = vector.broadcast %12 : vector<16x1xf32> to vector<16x256xf32>
    %46 = arith.addf %44, %45 : vector<16x256xf32>
    %47 = arith.addf %46, %14 : vector<16x256xf32>
    %c0_23 = arith.constant 0 : index
    %c0_24 = arith.constant 0 : index
    %c0_25 = arith.constant 0 : index
    %48 = vector.load %arg6[%c0_23, %c0_24, %c0_25] : memref<2x16x256xf32, #tpu.memory_space<vmem>>, vector<1x16x256xf32>
    %49 = vector.shape_cast %48 : vector<1x16x256xf32> to vector<16x256xf32>
    %50 = vector.shape_cast %47 : vector<16x256xf32> to vector<1x16x256xf32>
    tpu.vector_store %arg6[%c0_23, %c0_24, %c0_25], %50 {strides = array<i32>} : memref<2x16x256xf32, #tpu.memory_space<vmem>>, vector<1x16x256xf32>,
    %c1 = arith.constant 1 : index
    %c0_26 = arith.constant 0 : index
    %c0_27 = arith.constant 0 : index
    %51 = vector.load %arg1[%c1, %c0_26, %c0_27] : memref<2x16x256xf32, #tpu.memory_space<vmem>>, vector<1x16x256xf32>
    %52 = vector.shape_cast %51 : vector<1x16x256xf32> to vector<16x256xf32>
    %cst_28 = arith.constant 0.000000e+00 : f32
    %53 = vector.broadcast %cst_28 : f32 to vector<16x256xf32>
    %54 = arith.cmpf ogt, %52, %53 : vector<16x256xf32>
    %cst_29 = arith.constant 2.000000e-01 : f32
    %55 = vector.broadcast %cst_29 : f32 to vector<16x256xf32>
    %56 = arith.mulf %55, %52 : vector<16x256xf32>
    %57 = arith.select %54, %52, %56 : vector<16x256xi1>, vector<16x256xf32>
    %c1_i32_30 = arith.constant 1 : i32
    %58 = tpu.dynamic_rotate %57 by %c1_i32_30 dim 1 : vector<16x256xf32>, i32 -> vector<16x256xf32>
    %cst_31 = arith.constant 0.000000e+00 : f32
    %59 = vector.broadcast %cst_31 : f32 to vector<16x256xf32>
    %60 = arith.select %2, %58, %59 : vector<16x256xi1>, vector<16x256xf32>
    %c255_i32_32 = arith.constant 255 : i32
    %61 = tpu.dynamic_rotate %57 by %c255_i32_32 dim 1 : vector<16x256xf32>, i32 -> vector<16x256xf32>
    %cst_33 = arith.constant 0.000000e+00 : f32
    %62 = vector.broadcast %cst_33 : f32 to vector<16x256xf32>
    %63 = arith.select %4, %61, %62 : vector<16x256xi1>, vector<16x256xf32>
    %64 = tpu.concatenate %60, %57, %63 in 0 : vector<16x256xf32>, vector<16x256xf32>, vector<16x256xf32> -> vector<48x256xf32>
    %65 = arith.truncf %64 : vector<48x256xf32> to vector<48x256xbf16>
    %cst_34 = arith.constant dense<0.000000e+00> : vector<16x256xf32>
    %66 = tpu.matmul %9, %65, %cst_34 {dimension_numbers = #tpu.dot_dimension_numbers<[1], [0], [0], [1], [0, 0, 1, 1], [], []>} : vector<16x48xbf16>, vector<48x256xbf16>, vector<16x256xf32> -> vector<16x256xf32>
    %67 = vector.broadcast %11 : vector<16x1xf32> to vector<16x256xf32>
    %68 = arith.addf %66, %67 : vector<16x256xf32>
    %cst_35 = arith.constant 0.000000e+00 : f32
    %69 = vector.broadcast %cst_35 : f32 to vector<16x256xf32>
    %70 = arith.cmpf ogt, %68, %69 : vector<16x256xf32>
    %cst_36 = arith.constant 2.000000e-01 : f32
    %71 = vector.broadcast %cst_36 : f32 to vector<16x256xf32>
    %72 = arith.mulf %71, %68 : vector<16x256xf32>
    %73 = arith.select %70, %68, %72 : vector<16x256xi1>, vector<16x256xf32>
    %c3_i32_37 = arith.constant 3 : i32
    %74 = tpu.dynamic_rotate %73 by %c3_i32_37 dim 1 : vector<16x256xf32>, i32 -> vector<16x256xf32>
    %cst_38 = arith.constant 0.000000e+00 : f32
    %75 = vector.broadcast %cst_38 : f32 to vector<16x256xf32>
    %76 = arith.select %6, %74, %75 : vector<16x256xi1>, vector<16x256xf32>
    %c253_i32_39 = arith.constant 253 : i32
    %77 = tpu.dynamic_rotate %73 by %c253_i32_39 dim 1 : vector<16x256xf32>, i32 -> vector<16x256xf32>
    %cst_40 = arith.constant 0.000000e+00 : f32
    %78 = vector.broadcast %cst_40 : f32 to vector<16x256xf32>
    %79 = arith.select %8, %77, %78 : vector<16x256xi1>, vector<16x256xf32>
    %80 = tpu.concatenate %76, %73, %79 in 0 : vector<16x256xf32>, vector<16x256xf32>, vector<16x256xf32> -> vector<48x256xf32>
    %81 = arith.truncf %80 : vector<48x256xf32> to vector<48x256xbf16>
    %cst_41 = arith.constant dense<0.000000e+00> : vector<16x256xf32>
    %82 = tpu.matmul %10, %81, %cst_41 {dimension_numbers = #tpu.dot_dimension_numbers<[1], [0], [0], [1], [0, 0, 1, 1], [], []>} : vector<16x48xbf16>, vector<48x256xbf16>, vector<16x256xf32> -> vector<16x256xf32>
    %83 = vector.broadcast %12 : vector<16x1xf32> to vector<16x256xf32>
    %84 = arith.addf %82, %83 : vector<16x256xf32>
    %85 = arith.addf %84, %52 : vector<16x256xf32>
    %c1_42 = arith.constant 1 : index
    %c0_43 = arith.constant 0 : index
    %c0_44 = arith.constant 0 : index
    %86 = vector.load %arg6[%c1_42, %c0_43, %c0_44] : memref<2x16x256xf32, #tpu.memory_space<vmem>>, vector<1x16x256xf32>
    %87 = vector.shape_cast %86 : vector<1x16x256xf32> to vector<16x256xf32>
    %88 = vector.shape_cast %85 : vector<16x256xf32> to vector<1x16x256xf32>
    tpu.vector_store %arg6[%c1_42, %c0_43, %c0_44], %88 {strides = array<i32>} : memref<2x16x256xf32, #tpu.memory_space<vmem>>, vector<1x16x256xf32>,
    return
  }
  func.func @transform_0(%arg0: i32) -> (i32, i32, i32) {
    %c0_i32 = arith.constant 0 : i32
    %c0_i32_0 = arith.constant 0 : i32
    %c0_i32_1 = arith.constant 0 : i32
    return %arg0, %c0_i32, %c0_i32_0 : i32, i32, i32
  }
  func.func @transform_1(%arg0: i32) -> (i32, i32) {
    %c0_i32 = arith.constant 0 : i32
    %c0_i32_0 = arith.constant 0 : i32
    %c0_i32_1 = arith.constant 0 : i32
    return %c0_i32, %c0_i32_0 : i32, i32
  }
  func.func @transform_2(%arg0: i32) -> (i32, i32) {
    %c0_i32 = arith.constant 0 : i32
    %c0_i32_0 = arith.constant 0 : i32
    %c0_i32_1 = arith.constant 0 : i32
    return %c0_i32, %c0_i32_0 : i32, i32
  }
  func.func @transform_3(%arg0: i32) -> (i32, i32) {
    %c0_i32 = arith.constant 0 : i32
    %c0_i32_0 = arith.constant 0 : i32
    %c0_i32_1 = arith.constant 0 : i32
    return %c0_i32, %c0_i32_0 : i32, i32
  }
  func.func @transform_4(%arg0: i32) -> (i32, i32) {
    %c0_i32 = arith.constant 0 : i32
    %c0_i32_0 = arith.constant 0 : i32
    %c0_i32_1 = arith.constant 0 : i32
    return %c0_i32, %c0_i32_0 : i32, i32
  }
  func.func @transform_5(%arg0: i32) -> (i32, i32, i32) {
    %c0_i32 = arith.constant 0 : i32
    %c0_i32_0 = arith.constant 0 : i32
    %c0_i32_1 = arith.constant 0 : i32
    return %arg0, %c0_i32, %c0_i32_0 : i32, i32, i32
  }
}

</mosaic_0001>

<bundles_post_ra>
// kernel: tpu_custom_call.1
= control target key start
LH: loop header
LB: loop body
LE: loop exit
PB: predicated region body
PF: predicated region fallthrough
CT: control target
= control target key end

     0   :  { %10 = vsyncpa [#allocation3], 0  ;;  %s1555_s0 = inlined_call_operand.hbm [shape: f32[8,16,256], index: 0, kind: input, shape index: {}]   ;;  %s1556_s1 = inlined_call_operand.vmem [shape: bf16[16,48], index: 1, kind: input, shape index: {}]   ;;  %s1557_s2 = inlined_call_operand.vmem [shape: f32[16,1], index: 2, kind: input, shape index: {}]   ;;  %s1558_s3 = inlined_call_operand.vmem [shape: bf16[16,48], index: 3, kind: input, shape index: {}]   ;;  %s1559_s4 = inlined_call_operand.vmem [shape: f32[16,1], index: 4, kind: input, shape index: {}]   ;;  %s1560_s5 = inlined_call_operand.hbm [shape: f32[8,16,256], index: 5, kind: output, shape index: {}]  }
   0x1   :  { %12 = vsyncpa [#allocation3 + $0x1], 0 }
   0x2   :  { %13 = vsyncpa [#allocation4], 0 }
   0x3   :  { %15 = vsyncpa [#allocation4 + $0x1], 0  ;;  %s1125_s18 = smov 0   ;;  %s1127_s19 = smov 0  }
   0x4   :  { %s1129_s20 = smov 0   ;;  %s1131_s21 = smov 0  }
   0x5 LB: > { %s1146_s22 = sadd.s32 4294967295, %s1082_s21   ;;  %s793_s23 = sadd.s32 4294967294, %s1082_s21   ;;  %s1082_s21 = sphi %s1131_s21, %s1582_s21   ;;  %s1078_s20 = sphi %s1129_s20, %s1581_s20   ;;  %s1074_s19 = sphi %s1127_s19, %s1580_s19   ;;  %s1070_s18 = sphi %s1125_s18, %s1579_s18  }
   0x6   : > { %s1150_s24 = sadd.s32 1, %s1082_s21   ;;  %s28_s25 = sadd.s32 1, %s1078_s20 }
   0x7   : > { %s25_s26 = ssub.s32 %s1082_s21, %s1150_s24  ;;  %p35_p0 = scmp.ne.s32.totalorder %s1078_s20, %s1074_s19 }
   0x8   : > { %p26_p1 = scmp.eq.s32.totalorder %s25_s26, 0  ;;  %p36_p2 = scmp.eq.s32.totalorder %s1082_s21, 0 }
   0x9   : > { %p41_p3 = scmp.ne.s32.totalorder %s1074_s19, %s1070_s18  ;;  %p42_p4 = scmp.eq.s32.totalorder %s1146_s22, 0 }
   0xa   : > { %s1162_s27 = scalar_select %p26_p1, %s1078_s20, %s28_s25  }
   0xb   : > { %p1164_p5 = por %p36_p2, %p35_p0  ;;  %p1168_p6 = por %p42_p4, %p41_p3 }
   0xc   : > { %p149_p7 = scmp.eq.s32.totalorder %s1146_s22, 3  ;;  %p155_p8 = scmp.eq.s32.totalorder %s793_s23, 3 }
   0xd   : > { %s1564_s29 = scalar_select %p1168_p6, 1, 0 }
   0xe   : > { %p863_p9 = scmp.lt.s32.totalorder %s1082_s21, 4  ;;  %p1174_p10 = por %p149_p7, %p35_p0 }
   0xf   : > { %p1178_p11 = por %p155_p8, %p41_p3  ;;  %s187_s7 = sand.u32 1, %s1078_s20  }
  0x10   : > { %s1565_s30 = scalar_select %p1174_p10, 1, 0 }
  0x11   : > { %s1566_s6 = scalar_select %p1178_p11, 1, 0 }
  0x12   : > { %s848_s8 = sshll.u32 %s1082_s21, 10  ;;  %s796_s9 = sshll.u32 %s187_s7, 6 }
  0x13   : > { %s1187_s12 = scalar_lea.hbm %s1555_s0, %s848_s8  ;;  %s191_s13 = scalar_lea.vmem [#allocation2], %s796_s9 }
  0x14   : > { %s199_s14 = sshll.u32 %s191_s13, 4  ;;  %p1191_p12 = pnand %p863_p9, %p1164_p5  ;;  %s1195_s14 = int_to_ptr.vmem [resolvable:$true] %s199_s14 }
  0x15   : > { %s1197_s16 = scalar_lea.sflag [#allocation3], %s187_s7  ;;  %s990_s17 = scalar_lea.hbm %s1187_s12, 1024 }
  0x16   : > { %p991_p13 = scmp.ne.s32.totalorder %s1187_s12, %s990_s17  ;;  %p992_p0 = pneg %p1191_p12 }
  0x17   : > { %s995_s26 = scalar_lea.hbm %s1555_s0, 4096  ;;  %p996_p3 = scmp.lt.s32.totalorder %s1187_s12, %s1555_s0 }
  0x18   : > { %p993_p1 = pnand %p992_p0, %p991_p13  ;;  %p997_p4 = scmp.lt.s32.totalorder %s995_s26, %s990_s17 }
  0x1a   : > { %p994_p2 = pneg %p993_p1  ;;  %p998_p5 = por %p997_p4, %p996_p3 }
  0x1c   : > { %p999_p7 = pnand %p998_p5, %p994_p2 }
  0x1e   : > { %1002 = shalt.err (!%p999_p7)
}
  0x1f   : > { %s1003_s7 = scalar_lea.vmem %s1195_s14, 1024  ;;  %s1084_s9 = smov [#allocation2]  }
  0x20   : > { %p1004_p8 = scmp.ne.s32.totalorder %s1195_s14, %s1003_s7  ;;  %s1008_s10 = sshll.u32 %s1084_s9, 4  ;;  %s1009_s10 = int_to_ptr.vmem [resolvable:$false] %s1008_s10 }
  0x21   : > { %s1010_s11 = scalar_lea.vmem %s1009_s10, 2048  ;;  %p1011_p1 = scmp.lt.s32.totalorder %s1195_s14, %s1009_s10 }
  0x22   : > { %p1006_p9 = pnand %p1004_p8, %p992_p0  ;;  %p1012_p11 = scmp.lt.s32.totalorder %s1010_s11, %s1003_s7 }
  0x24   : > { %p1007_p13 = pneg %p1006_p9  ;;  %p1013_p10 = por %p1012_p11, %p1011_p1 }
  0x26   : > { %p1014_p6 = pnand %p1013_p10, %p1007_p13 }
  0x28   : > { %1017 = shalt.err (!%p1014_p6)
}
  0x29   : > { %s1085_s13 = smov 256   ;;  %s1086_s17 = smov 16  }
  0x2a   : > { %858 = dma.hbm_to_vmem [thread:$0]  (!%p1191_p12), %s1187_s12, 1024, %s1195_s14, %s1197_s16, %s1085_s13, %s1085_s13, %s1086_s17  }
  0x2b   : > { %p800_p0 = scmp.ge.s32.totalorder %s1082_s21, 1  ;;  %p207_p2 = scmp.lt.s32.totalorder %s1082_s21, 5 }
  0x2d   : > { %p208_p3 = pnand %p800_p0, %p207_p2 }
  0x2e   : > { %s1221_s23 = sand.u32 (!%p208_p3), 1, %s1074_s19   ;;  %p1568_p6 = scmp.ne.s32.totalorder (!%p208_p3), %s1564_s29, 0 }
  0x2f   : > { %211 = sbr.rel (%p208_p3) target bundleno = 763 (0x2fb), region = 40  ;;  %s801_s25 = sshll.u32 (!%p208_p3), %s1221_s23, 6 }
  0x30   : > { %s214_s26 = scalar_lea.sflag (!%p208_p3), [#allocation3], %s1221_s23  ;;  %s217_s28 = scalar_lea.vmem (!%p208_p3), [#allocation2], %s801_s25 }
  0x34   : > { %1061 = dma.done.wait (%p1568_p6), %s214_s26, 1024  }
  0x35   : > { %1063 = vsyncadd (%p1568_p6), %s214_s26, 4294966272  ;;  %v1231_v0 = vld [vmem:[%s217_s28] sm:$0xff]  ;;  %v1233_v1 = vld [vmem:[%s217_s28 + $0x10] sm:$0xff]  ;;  %s1087_s29 = smov 127   ;;  %s1088_s12 = smov 1   ;;  %v1089_v30 = vmov 0   ;;  %v247_v35 = vlaneseq }
  0x36   : > { %v1235_v2 = vld [vmem:[%s217_s28 + $0x8] sm:$0xff]  ;;  %vm270_vm0 = vcmp.gt.f32.partialorder %v1231_v0, 0.0  ;;  %vm272_vm1 = vcmp.gt.f32.partialorder %v1233_v1, 0.0  ;;  %v274_v3 = vmul.f32 0.2, %v1231_v0  ;;  %v1241_v5 = vld [vmem:[%s217_s28 + $0x18] sm:$0xff]  ;;  %373 = vmatprep.mubr.bf16.mxu0 %v1089_v30  ;;  %946 = vset.pattern.permute.xlu0 %v1089_v30 }
  0x37   : > { %v276_v4 = vmul.f32 0.2, %v1233_v1  ;;  %vm271_vm2 = vcmp.gt.f32.partialorder %v1235_v2, 0.0  ;;  %v275_v6 = vmul.f32 0.2, %v1235_v2  ;;  %v1245_v7 = vld [vmem:[%s217_s28 + $0x28] sm:$0xff]  ;;  %947 = vset.pattern.permute.xlu1 %v1089_v30  ;;  %486 = vmatprep.mubr.bf16.mxu1 %v1089_v30 }
  0x38   : > { %v1247_v8 = vld [vmem:[%s217_s28 + $0x38] sm:$0xff]  ;;  %v1250_v9 = vsel %vm270_vm0, %v1231_v0, %v274_v3  ;;  %vm273_vm3 = vcmp.gt.f32.partialorder %v1241_v5, 0.0  ;;  %v277_v11 = vmul.f32 0.2, %v1241_v5  ;;  %v1257_v12 = vld [vmem:[%s217_s28 + $0x20] sm:$0xff]  ;;  %v1259_v13 = vld [vmem:[%s217_s28 + $0x30] sm:$0xff] }
  0x39   : > { %v1253_v10 = vsel %vm272_vm1, %v1233_v1, %v276_v4  ;;  %v1264_v15 = vsel %vm271_vm2, %v1235_v2, %v275_v6  ;;  %vm511_vm4 = vcmp.gt.f32.partialorder %v1245_v7, 0.0  ;;  %vm513_vm5 = vcmp.gt.f32.partialorder %v1247_v8, 0.0  ;;  %v262_v33 = vld [vmem:[%s1557_s2] sm:$0xff]  ;;  %v263_v34 = vld [vmem:[%s1557_s2 + $0x8] sm:$0xff]  ;;  %s1090_s10 = smov 125   ;;  %s1091_s11 = smov 3  }
  0x3a   : > { %v906_v14 = vpack.i.bf16 %v1253_v10, %v1250_v9  ;;  %v1268_v16 = vsel %vm273_vm3, %v1241_v5, %v277_v11  ;;  %v515_v17 = vmul.f32 0.2, %v1245_v7  ;;  %v517_v18 = vmul.f32 0.2, %v1247_v8  ;;  %s243_s14 = scalar_lea.vmem [#allocation5], %s801_s25  ;;  %s850_s15 = sshll.u32 %s1146_s22, 10 }
  0x3b   : > { %v911_v19 = vpack.i.bf16 %v1268_v16, %v1264_v15  ;;  %vm510_vm6 = vcmp.gt.f32.partialorder %v1257_v12, 0.0  ;;  %vm512_vm7 = vcmp.gt.f32.partialorder %v1259_v13, 0.0  ;;  %v514_v22 = vmul.f32 0.2, %v1257_v12  ;;  %s720_s25 = sshll.u32 %s243_s14, 4  ;;  %s1512_s7 = scalar_lea.hbm %s1560_s5, %s850_s15  ;;  %s1506_s25 = int_to_ptr.vmem [resolvable:$true] %s720_s25 }
  0x3c   : > { %907 = vrot.lane.b32.xlu0 %v906_v14, %s1087_s29  ;;  %917 = vrot.lane.b32.xlu1 %v906_v14, %s1088_s12  ;;  %v1278_v20 = vsel %vm511_vm4, %v1245_v7, %v515_v17  ;;  %v1281_v21 = vsel %vm513_vm5, %v1247_v8, %v517_v18  ;;  %v516_v23 = vmul.f32 0.2, %v1259_v13  ;;  %v319_v24 = vpack.c.bf16 %v1268_v16, %v1264_v15  ;;  %s706_s22 = scalar_lea.sflag [#allocation4], %s1221_s23  ;;  %s1018_s9 = scalar_lea.vmem %s1506_s25, 1024 }
  0x3d   : > { %v318_v25 = vpack.c.bf16 %v1253_v10, %v1250_v9  ;;  %v1290_v26 = vsel %vm510_vm6, %v1257_v12, %v514_v22  ;;  %v931_v28 = vpack.i.bf16 %v1281_v21, %v1278_v20  ;;  %v557_v31 = vpack.c.bf16 %v1281_v21, %v1278_v20  ;;  %v988_v9 = vld [vmem:[%s1556_s1] sm:$0xff]   ;;  %p1019_p10 = scmp.ne.s32.totalorder %s1506_s25, %s1018_s9  ;;  %p1577_p11 = scmp.ne.s32.totalorder %s1565_s30, 0 }
  0x3e   : > { %v1293_v27 = vsel %vm512_vm7, %v1259_v13, %v516_v23  ;;  %v1313_v36 = vand.u32 127, %v247_v35  ;;  %vm337_vm14 = vcmask 392192  }
  0x3f   : > { %v926_v29 = vpack.i.bf16 %v1293_v27, %v1290_v26  ;;  %v556_v32 = vpack.c.bf16 %v1293_v27, %v1290_v26  ;;  %p1020_p12 = pnand %p1019_p10, %p1577_p11 }
  0x40   : > { %912 = vrot.lane.b32.xlu0 %v911_v19, %s1087_s29  ;;  %922 = vrot.lane.b32.xlu1 %v911_v19, %s1088_s12  ;;  %v1316_v39 = vadd.s32 128, %v1313_v36  ;;  %vm307_vm9 = vcmp.lt.s32.totalorder %v1313_v36, 127  ;;  %vm290_vm11 = vcmp.lt.s32.totalorder %v1313_v36, 1  ;;  %vm250_vm12 = vcmp.ge.s32.totalorder %v1313_v36, 1 }
  0x41   : > { %vm1355_vm13 = vmpackc.low %vm250_vm12, %vm250_vm12  ;;  %p1021_p4 = pneg %p1020_p12 }
  0x42   : > { %vm253_vm8 = vcmp.lt.s32.totalorder %v1316_v39, 255  ;;  %vm257_vm7 = vcmp.lt.s32.totalorder %v1316_v39, 253 }
  0x43   : > { %vm1324_vm10 = vmpackc.low %vm253_vm8, %vm253_vm8  ;;  %vm421_vm8 = vcmp.lt.s32.totalorder %v1313_v36, 125 }
  0x44   : > { %932 = vrot.lane.b32.xlu1 %v931_v28, %s1087_s29  ;;  %927 = vrot.lane.b32.xlu0 %v926_v29, %s1087_s29 }
  0x48   : > { %942 = vrot.lane.b32.xlu1 %v931_v28, %s1088_s12  ;;  %937 = vrot.lane.b32.xlu0 %v926_v29, %s1088_s12 }
  0x4c   : > { %324 = vperm.xlu0 %946, %v262_v33   ;;  %329 = vperm.xlu1 %947, %v263_v34  }
  0xae   : > { %v908_v37 = vpop.permute.xlu0 %907  ;;  %v918_v38 = vpop.permute.xlu1 %917 }
  0xaf   : > { %v910_v42 = vunpack.i.h.bf16 %v908_v37  ;;  %v909_v43 = vunpack.i.l.bf16 %v908_v37  ;;  %v920_v46 = vunpack.i.h.bf16 %v918_v38  ;;  %v919_v47 = vunpack.i.l.bf16 %v918_v38 }
  0xb2   : > { %v913_v40 = vpop.permute.xlu0 %912  ;;  %v923_v41 = vpop.permute.xlu1 %922 }
  0xb3   : > { %v915_v44 = vunpack.i.h.bf16 %v913_v40  ;;  %v914_v45 = vunpack.i.l.bf16 %v913_v40  ;;  %v925_v48 = vunpack.i.h.bf16 %v923_v41  ;;  %v924_v49 = vunpack.i.l.bf16 %v923_v41 }
  0xb5   : > { %v310_v50 = vsel %vm307_vm9, %v914_v45, %v909_v43  ;;  %v311_v51 = vsel %vm307_vm9, %v915_v44, %v910_v42  ;;  %v308_v54 = vsel %vm307_vm9, %v909_v43, %v914_v45  ;;  %v309_v55 = vsel %vm307_vm9, %v910_v42, %v915_v44 }
  0xb6   : > { %v805_v53 = vpack.c.bf16 %v311_v51, %v310_v50  ;;  %v933_v56 = vpop.permute.xlu1 %932  ;;  %v928_v57 = vpop.permute.xlu0 %927  ;;  %v320_v58 = vpack.c.bf16 %v309_v55, %v308_v54  ;;  %v291_v63 = vsel %vm290_vm11, %v919_v47, %v924_v49  ;;  %v292_v3 = vsel %vm290_vm11, %v920_v46, %v925_v48 }
  0xb7   : > { %v935_v59 = vunpack.i.h.bf16 %v933_v56  ;;  %v934_v60 = vunpack.i.l.bf16 %v933_v56  ;;  %v930_v61 = vunpack.i.h.bf16 %v928_v57  ;;  %v929_v62 = vunpack.i.l.bf16 %v928_v57 }
  0xb8   : > { %806 = vmatprep.subr.msk.bf16.mxu0 %vm1324_vm10, %v805_v53  ;;  %v293_v4 = vsel %vm290_vm11, %v924_v49, %v919_v47  ;;  %v294_v6 = vsel %vm290_vm11, %v925_v48, %v920_v46  ;;  %v317_v15 = vpack.c.bf16 %v292_v3, %v291_v63 }
  0xb9   : > { %352 = vmatpush1.bf16.msra.mxu0 %v320_v58  ;;  %v549_v11 = vsel %vm307_vm9, %v935_v59, %v930_v61  ;;  %v548_v14 = vsel %vm307_vm9, %v934_v60, %v929_v62  ;;  %v808_v18 = vpack.c.bf16 %v294_v6, %v293_v4  ;;  %v547_v19 = vsel %vm307_vm9, %v930_v61, %v935_v59 }
  0xba   : > { %353 = vmatprep.subr.bf16.mxu0 %v319_v24  ;;  %v943_v16 = vpop.permute.xlu1 %942  ;;  %v938_v17 = vpop.permute.xlu0 %937  ;;  %v546_v22 = vsel %vm307_vm9, %v929_v62, %v934_v60  ;;  %v824_v23 = vpack.c.bf16 %v549_v11, %v548_v14  ;;  %vm404_vm9 = vcmp.lt.s32.totalorder %v1313_v36, 3 }
  0xbb   : > { %v945_v28 = vunpack.i.h.bf16 %v943_v16  ;;  %v944_v29 = vunpack.i.l.bf16 %v943_v16  ;;  %v940_v33 = vunpack.i.h.bf16 %v938_v17  ;;  %v939_v34 = vunpack.i.l.bf16 %v938_v17 }
  0xbc   : > { %v558_v10 = vpack.c.bf16 %v547_v19, %v546_v22 }
  0xbd   : > { %354 = vmatpush1.bf16.msra.mxu0 %v318_v25  ;;  %v530_v25 = vsel %vm290_vm11, %v939_v34, %v944_v29  ;;  %v531_v35 = vsel %vm290_vm11, %v940_v33, %v945_v28  ;;  %v533_v37 = vsel %vm290_vm11, %v945_v28, %v940_v33  ;;  %v532_v38 = vsel %vm290_vm11, %v944_v29, %v939_v34  ;;  %v264_v29 = vld [vmem:[%s1559_s4] sm:$0xff]  ;;  %v265_v33 = vld [vmem:[%s1559_s4 + $0x8] sm:$0xff] }
  0xbe   : > { %355 = vmatprep.subr.bf16.mxu0 %v317_v15  ;;  %v555_v40 = vpack.c.bf16 %v531_v35, %v530_v25  ;;  %v827_v41 = vpack.c.bf16 %v533_v37, %v532_v38  ;;  %vm254_vm11 = vcmp.ge.s32.totalorder %v1313_v36, 3 }
  0xbf   : > { %vm1459_vm12 = vmpackc.low %vm254_vm11, %vm254_vm11 }
  0xc1   : > { %809 = vmatpush1.bf16.msk.msra.mxu0 %vm1355_vm13, %v808_v18 }
  0xc2   : > { %825 = vmatprep.subr.msk.bf16.mxu0 %vm1324_vm10, %v824_v23  ;;  %vm1434_vm10 = vmpackc.low %vm257_vm7, %vm257_vm7 }
  0xc4   : > { %810 = vmatmul.mubr.msk.bf16.vlgmr.msra.gmra.mxu0 %vm337_vm14, %v988_v9 }
  0xc5   : > { %571 = vmatpush1.bf16.msra.mxu0 %v558_v10  ;;  %592 = vmatprep.mubr.bf16.mxu0 %v1089_v30 }
  0xc6   : > { %572 = vmatprep.subr.bf16.mxu0 %v557_v31 }
  0xc7   : > { %v325_v42 = vpop.permute.xlu0 %324  ;;  %v330_v46 = vpop.permute.xlu1 %329 }
  0xc9   : > { %573 = vmatpush1.bf16.msra.mxu0 %v556_v32 }
  0xca   : > { %574 = vmatprep.subr.bf16.mxu0 %v555_v40 }
  0xcd   : > { %828 = vmatpush1.bf16.msk.msra.mxu0 %vm1355_vm13, %v827_v41 }
  0xd0   : > { %829 = vmatmul.mubr.msk.bf16.vlgmr.msra.gmra.mxu0 %vm337_vm14, %v988_v9 }
 0x184   : > { %v375_v43 = vpop.f32.mrf.mxu0 }
 0x185   : > { %v376_v44 = vadd.f32 %v375_v43, %v325_v42 }
 0x186   : > { %v377_v45 = vpop.f32.mrf.mxu0 }
 0x187   : > { %v378_v47 = vadd.f32 %v377_v45, %v325_v42  ;;  %v388_v21 = vmul.f32 0.2, %v376_v44  ;;  %vm384_vm15 = vcmp.gt.f32.partialorder %v376_v44, 0.0 }
 0x188   : > { %v379_v20 = vpop.f32.mrf.mxu0 }
 0x189   : > { %v380_v31 = vadd.f32 %v379_v20, %v330_v46  ;;  %v389_v49 = vmul.f32 0.2, %v378_v47  ;;  %vm385_vm1 = vcmp.gt.f32.partialorder %v378_v47, 0.0  ;;  %v1385_v32 = vsel %vm384_vm15, %v376_v44, %v388_v21 }
 0x18a   : > { %v381_v48 = vpop.f32.mrf.mxu0 }
 0x18b   : > { %vm386_vm0 = vcmp.gt.f32.partialorder %v380_v31, 0.0  ;;  %v390_v26 = vmul.f32 0.2, %v380_v31  ;;  %v382_v27 = vadd.f32 %v381_v48, %v330_v46  ;;  %v1393_v54 = vsel %vm385_vm1, %v378_v47, %v389_v49 }
 0x18d   : > { %v1387_v50 = vsel %vm386_vm0, %v380_v31, %v390_v26  ;;  %vm387_vm2 = vcmp.gt.f32.partialorder %v382_v27, 0.0  ;;  %v391_v51 = vmul.f32 0.2, %v382_v27 }
 0x18e   : > { %v948_v52 = vpack.i.bf16 %v1387_v50, %v1385_v32  ;;  %v432_v53 = vpack.c.bf16 %v1387_v50, %v1385_v32 }
 0x18f   : > { %v1395_v55 = vsel %vm387_vm2, %v382_v27, %v391_v51 }
 0x190   : > { %v594_v56 = vpop.f32.mrf.mxu0  ;;  %949 = vrot.lane.b32.xlu1 %v948_v52, %s1090_s10  ;;  %v953_v57 = vpack.i.bf16 %v1395_v55, %v1393_v54  ;;  %v433_v58 = vpack.c.bf16 %v1395_v55, %v1393_v54 }
 0x191   : > { %v595_v59 = vadd.f32 %v594_v56, %v325_v42 }
 0x192   : > { %v596_v60 = vpop.f32.mrf.mxu0  ;;  %954 = vrot.lane.b32.xlu0 %v953_v57, %s1090_s10 }
 0x193   : > { %v597_v61 = vadd.f32 %v596_v60, %v325_v42  ;;  %v607_v63 = vmul.f32 0.2, %v595_v59  ;;  %vm603_vm3 = vcmp.gt.f32.partialorder %v595_v59, 0.0 }
 0x194   : > { %v598_v62 = vpop.f32.mrf.mxu0  ;;  %959 = vrot.lane.b32.xlu1 %v948_v52, %s1091_s11 }
 0x195   : > { %v599_v3 = vadd.f32 %v598_v62, %v330_v46  ;;  %v608_v6 = vmul.f32 0.2, %v597_v61  ;;  %vm604_vm5 = vcmp.gt.f32.partialorder %v597_v61, 0.0  ;;  %v1403_v15 = vsel %vm603_vm3, %v595_v59, %v607_v63  ;;  %v989_v62 = vld [vmem:[%s1558_s3] sm:$0xff]  }
 0x196   : > { %v600_v4 = vpop.f32.mrf.mxu0  ;;  %964 = vrot.lane.b32.xlu0 %v953_v57, %s1091_s11 }
 0x197   : > { %vm605_vm4 = vcmp.gt.f32.partialorder %v599_v3, 0.0  ;;  %v609_v11 = vmul.f32 0.2, %v599_v3  ;;  %v601_v14 = vadd.f32 %v600_v4, %v330_v46  ;;  %v1411_v22 = vsel %vm604_vm5, %v597_v61, %v608_v6 }
 0x199   : > { %v1405_v16 = vsel %vm605_vm4, %v599_v3, %v609_v11  ;;  %vm606_vm6 = vcmp.gt.f32.partialorder %v601_v14, 0.0  ;;  %v610_v17 = vmul.f32 0.2, %v601_v14 }
 0x19a   : > { %v649_v18 = vpack.c.bf16 %v1405_v16, %v1403_v15  ;;  %v968_v19 = vpack.i.bf16 %v1405_v16, %v1403_v15 }
 0x19b   : > { %v1413_v23 = vsel %vm606_vm6, %v601_v14, %v610_v17 }
 0x19c   : > { %969 = vrot.lane.b32.xlu1 %v968_v19, %s1090_s10  ;;  %v973_v24 = vpack.i.bf16 %v1413_v23, %v1411_v22  ;;  %v650_v28 = vpack.c.bf16 %v1413_v23, %v1411_v22 }
 0x19e   : > { %974 = vrot.lane.b32.xlu0 %v973_v24, %s1090_s10  ;;  %s1092_s10 = smov [#allocation5]  }
 0x1a0   : > { %979 = vrot.lane.b32.xlu1 %v968_v19, %s1091_s11 }
 0x1a2   : > { %984 = vrot.lane.b32.xlu0 %v973_v24, %s1091_s11  ;;  %s1022_s11 = sshll.u32 %s1092_s10, 4  ;;  %s1023_s11 = int_to_ptr.vmem [resolvable:$false] %s1022_s11 }
 0x1a3   : > { %s1024_s13 = scalar_lea.vmem %s1023_s11, 2048  ;;  %p1025_p5 = scmp.lt.s32.totalorder %s1506_s25, %s1023_s11 }
 0x1a4   : > { %438 = vperm.xlu1 %947, %v264_v29   ;;  %p1026_p7 = scmp.lt.s32.totalorder %s1024_s13, %s1018_s9 }
 0x1a6   : > { %443 = vperm.xlu0 %946, %v265_v33   ;;  %p1027_p8 = por %p1026_p7, %p1025_p5 }
 0x1a8   : > { %p1028_p9 = pnand %p1027_p8, %p1021_p4 }
 0x202   : > { %v950_v34 = vpop.permute.xlu1 %949 }
 0x203   : > { %v952_v10 = vunpack.i.h.bf16 %v950_v34  ;;  %v951_v25 = vunpack.i.l.bf16 %v950_v34 }
 0x204   : > { %v955_v9 = vpop.permute.xlu0 %954 }
 0x205   : > { %v957_v35 = vunpack.i.h.bf16 %v955_v9  ;;  %v956_v37 = vunpack.i.l.bf16 %v955_v9 }
 0x206   : > { %v960_v38 = vpop.permute.xlu1 %959 }
 0x207   : > { %v424_v40 = vsel %vm421_vm8, %v956_v37, %v951_v25  ;;  %v425_v41 = vsel %vm421_vm8, %v957_v35, %v952_v10  ;;  %v962_v39 = vunpack.i.h.bf16 %v960_v38  ;;  %v422_v45 = vsel %vm421_vm8, %v951_v25, %v956_v37 }
 0x208   : > { %v965_v43 = vpop.permute.xlu0 %964  ;;  %v813_v44 = vpack.c.bf16 %v425_v41, %v424_v40  ;;  %v423_v46 = vsel %vm421_vm8, %v952_v10, %v957_v35  ;;  %v961_v47 = vunpack.i.l.bf16 %v960_v38 }
 0x209   : > { %v967_v20 = vunpack.i.h.bf16 %v965_v43  ;;  %v966_v21 = vunpack.i.l.bf16 %v965_v43  ;;  %v434_v31 = vpack.c.bf16 %v423_v46, %v422_v45 }
 0x20a   : > { %814 = vmatprep.subr.msk.bf16.mxu1 %vm1434_vm10, %v813_v44 }
 0x20b   : > { %465 = vmatpush1.bf16.msra.mxu1 %v434_v31  ;;  %v405_v48 = vsel %vm404_vm9, %v961_v47, %v966_v21  ;;  %v406_v49 = vsel %vm404_vm9, %v962_v39, %v967_v20  ;;  %v407_v26 = vsel %vm404_vm9, %v966_v21, %v961_v47  ;;  %v408_v27 = vsel %vm404_vm9, %v967_v20, %v962_v39 }
 0x20c   : > { %466 = vmatprep.subr.bf16.mxu1 %v433_v58  ;;  %v431_v52 = vpack.c.bf16 %v406_v49, %v405_v48  ;;  %v816_v56 = vpack.c.bf16 %v408_v27, %v407_v26 }
 0x20e   : > { %v970_v51 = vpop.permute.xlu1 %969 }
 0x20f   : > { %467 = vmatpush1.bf16.msra.mxu1 %v432_v53  ;;  %v972_v55 = vunpack.i.h.bf16 %v970_v51  ;;  %v971_v58 = vunpack.i.l.bf16 %v970_v51 }
 0x210   : > { %v975_v57 = vpop.permute.xlu0 %974  ;;  %468 = vmatprep.subr.bf16.mxu1 %v431_v52 }
 0x211   : > { %v977_v59 = vunpack.i.h.bf16 %v975_v57  ;;  %v976_v60 = vunpack.i.l.bf16 %v975_v57 }
 0x212   : > { %v980_v61 = vpop.permute.xlu1 %979 }
 0x213   : > { %v639_v32 = vsel %vm421_vm8, %v971_v58, %v976_v60  ;;  %v640_v50 = vsel %vm421_vm8, %v972_v55, %v977_v59  ;;  %v641_v53 = vsel %vm421_vm8, %v976_v60, %v971_v58  ;;  %v642_v63 = vsel %vm421_vm8, %v977_v59, %v972_v55  ;;  %817 = vmatpush1.bf16.msk.msra.mxu1 %vm1459_vm12, %v816_v56 }
 0x214   : > { %v651_v3 = vpack.c.bf16 %v640_v50, %v639_v32  ;;  %v831_v4 = vpack.c.bf16 %v642_v63, %v641_v53  ;;  %v985_v6 = vpop.permute.xlu0 %984  ;;  %v982_v11 = vunpack.i.h.bf16 %v980_v61  ;;  %v981_v14 = vunpack.i.l.bf16 %v980_v61 }
 0x215   : > { %v987_v17 = vunpack.i.h.bf16 %v985_v6  ;;  %v986_v19 = vunpack.i.l.bf16 %v985_v6 }
 0x216   : > { %818 = vmatmul.mubr.msk.bf16.vlgmr.msra.gmra.mxu1 %vm337_vm14, %v989_v62  ;;  %832 = vmatprep.subr.msk.bf16.mxu1 %vm1434_vm10, %v831_v4 }
 0x217   : > { %664 = vmatpush1.bf16.msra.mxu1 %v651_v3  ;;  %v623_v24 = vsel %vm404_vm9, %v981_v14, %v986_v19  ;;  %v624_v29 = vsel %vm404_vm9, %v982_v11, %v987_v17  ;;  %685 = vmatprep.mubr.bf16.mxu1 %v1089_v30  ;;  %v625_v33 = vsel %vm404_vm9, %v986_v19, %v981_v14 }
 0x218   : > { %665 = vmatprep.subr.bf16.mxu1 %v650_v28  ;;  %v626_v34 = vsel %vm404_vm9, %v987_v17, %v982_v11  ;;  %v648_v9 = vpack.c.bf16 %v624_v29, %v623_v24 }
 0x219   : > { %v834_v10 = vpack.c.bf16 %v626_v34, %v625_v33 }
 0x21b   : > { %666 = vmatpush1.bf16.msra.mxu1 %v649_v18 }
 0x21c   : > { %667 = vmatprep.subr.bf16.mxu1 %v648_v9 }
 0x21f   : > { %835 = vmatpush1.bf16.msk.msra.mxu1 %vm1459_vm12, %v834_v10  ;;  %v439_v30 = vpop.permute.xlu1 %438 }
 0x221   : > { %v444_v35 = vpop.permute.xlu0 %443 }
 0x222   : > { %836 = vmatmul.mubr.msk.bf16.vlgmr.msra.gmra.mxu1 %vm337_vm14, %v989_v62 }
 0x2d6   : > { %v488_v22 = vpop.f32.mrf.mxu1 }
 0x2d7   : > { %v489_v23 = vadd.f32 %v488_v22, %v439_v30 }
 0x2d8   : > { %v490_v28 = vpop.f32.mrf.mxu1 }
 0x2d9   : > { %v497_v36 = vadd.f32 %v489_v23, %v1231_v0  ;;  %v491_v25 = vadd.f32 %v490_v28, %v439_v30 }
 0x2da   : > { %v492_v37 = vpop.f32.mrf.mxu1 }
 0x2db   : > { %501 = vst [vmem:[%s243_s14] sm:$0xff] %v497_v36  ;;  %v498_v15 = vadd.f32 %v491_v25, %v1235_v2  ;;  %v493_v16 = vadd.f32 %v492_v37, %v444_v35 }
 0x2dc   : > { %v494_v18 = vpop.f32.mrf.mxu1 }
 0x2dd   : > { %502 = vst [vmem:[%s243_s14 + $0x8] sm:$0xff] %v498_v15  ;;  %v499_v38 = vadd.f32 %v493_v16, %v1233_v1  ;;  %v495_v40 = vadd.f32 %v494_v18, %v444_v35 }
 0x2df   : > { %503 = vst [vmem:[%s243_s14 + $0x10] sm:$0xff] %v499_v38  ;;  %v500_v41 = vadd.f32 %v495_v40, %v1241_v5 }
 0x2e1   : > { %504 = vst [vmem:[%s243_s14 + $0x18] sm:$0xff] %v500_v41 }
 0x2e2   : > { %v687_v0 = vpop.f32.mrf.mxu1 }
 0x2e3   : > { %v688_v42 = vadd.f32 %v687_v0, %v439_v30 }
 0x2e4   : > { %v689_v39 = vpop.f32.mrf.mxu1 }
 0x2e5   : > { %v696_v43 = vadd.f32 %v1257_v12, %v688_v42  ;;  %v690_v44 = vadd.f32 %v689_v39, %v439_v30 }
 0x2e6   : > { %v691_v2 = vpop.f32.mrf.mxu1 }
 0x2e7   : > { %837 = vst [vmem:[%s243_s14 + $0x20] sm:$0xff] %v696_v43  ;;  %v697_v45 = vadd.f32 %v1245_v7, %v690_v44  ;;  %v692_v46 = vadd.f32 %v691_v2, %v444_v35 }
 0x2e8   : > { %v693_v1 = vpop.f32.mrf.mxu1 }
 0x2e9   : > { %838 = vst [vmem:[%s243_s14 + $0x28] sm:$0xff] %v697_v45  ;;  %v698_v5 = vadd.f32 %v1259_v13, %v692_v46  ;;  %v694_v12 = vadd.f32 %v693_v1, %v444_v35 }
 0x2eb   : > { %839 = vst [vmem:[%s243_s14 + $0x30] sm:$0xff] %v698_v5  ;;  %v699_v7 = vadd.f32 %v1247_v8, %v694_v12 }
 0x2ed   : > { %840 = vst [vmem:[%s243_s14 + $0x38] sm:$0xff] %v699_v7 }
 0x2ee   : > { %1031 = shalt.err (!%p1028_p9)
}
 0x2ef   : > { %s1032_s17 = scalar_lea.hbm %s1512_s7, 1024  ;;  %s1036_s29 = scalar_lea.hbm %s1560_s5, 4096 }
 0x2f0   : > { %p1033_p13 = scmp.ne.s32.totalorder %s1512_s7, %s1032_s17  ;;  %p1037_p2 = scmp.lt.s32.totalorder %s1512_s7, %s1560_s5 }
 0x2f1   : > { %p1038_p3 = scmp.lt.s32.totalorder %s1036_s29, %s1032_s17 }
 0x2f2   : > { %p1034_p1 = pnand %p1033_p13, %p1577_p11 }
 0x2f3   : > { %p1039_p6 = por %p1038_p3, %p1037_p2 }
 0x2f4   : > { %p1035_p0 = pneg %p1034_p1 }
 0x2f6   : > { %p1040_p10 = pnand %p1039_p6, %p1035_p0 }
 0x2f8   : > { %1043 = shalt.err (!%p1040_p10)
}
 0x2f9   : > { %s1093_s15 = smov 256   ;;  %s1094_s16 = smov 16  }
 0x2fa   : > { %853 = dma.vmem_to_hbm [thread:$0]  (%p1577_p11), %s1506_s25, 1024, %s1512_s7, %s706_s22, %s1093_s15, %s1093_s15, %s1094_s16  }
 0x2fb PF: > { %p864_p12 = scmp.ge.s32.totalorder %s1082_s21, 2  ;;  %s735_s8 = sand.u32 1, %s1070_s18  }
 0x2fc   : > { %p1578_p4 = scmp.ne.s32.totalorder %s1566_s6, 0  ;;  %s736_s9 = scalar_lea.sflag [#allocation4], %s735_s8 }
 0x2fe   : > { %p860_p5 = pnand %p864_p12, %p1578_p4 }
 0x300   : > { %p861_p7 = pneg %p860_p5 }
 0x302   : > { %1065 = dma.done.wait (%p861_p7), %s736_s9, 1024  }
 0x303   : > { %1067 = vsyncadd (%p861_p7), %s736_s9, 4294966272  ;;  %p18_p8 = scmp.ge.s32.totalorder %s1150_s24, 6   ;;  %s1579_s18 = smov %s1074_s19 }
 0x304   : > { %s1580_s19 = smov %s1078_s20  ;;  %s1581_s20 = smov %s1162_s27 }
 0x305   : > { %s1582_s21 = smov %s1150_s24  ;;  %20 = sbr.rel (!%p18_p8) target bundleno = 5 (0x5), region = 87 }
 0x30a   :  { %741 = vsyncpa [#allocation3], 1 }
 0x30b   :  { %743 = vsyncpa [#allocation3 + $0x1], 1 }
 0x30c   :  { %744 = vsyncpa [#allocation4], 1 }
 0x30d   :  { %746 = vsyncpa [#allocation4 + $0x1], 1 }

</bundles_post_ra>
